<compile_context>
chip_gen: v5e
topology: v5e:2x2
jax: 0.10.0
libtpu: 0.0.40
codegen_flags: <defaults>
</compile_context>

<pallas_src>
import jax
import jax.numpy as jnp
from jax.experimental import pallas as pl
from jax.experimental.pallas import tpu as pltpu

LANE = 128


def _round_up(x, m):
    return (x + m - 1) // m * m


def qnetwork_kernel(x_ref, w1_ref, b1_ref, w2_ref, b2_ref, o_ref):
    # Layer 1: (TB, K) @ (K, 128) on the MXU, f32 accumulation.
    h1 = jnp.dot(x_ref[...], w1_ref[...], preferred_element_type=jnp.float32)
    # Bias + ReLU on the VPU in f32 (padded hidden columns stay exactly 0).
    h1 = jnp.maximum(h1 + b1_ref[...], 0.0)
    # Layer 2: (TB, 128) @ (128, 128) -> lane-dense (TB, 128) f32 store.
    h2 = jnp.dot(h1.astype(w2_ref.dtype), w2_ref[...],
                 preferred_element_type=jnp.float32)
    o_ref[...] = h2 + b2_ref[...]


def qnetwork_forward(states, w1, b1, w2, b2, *, block_batch=256,
                     matmul_dtype=jnp.bfloat16):
    """Forward pass of QNetwork.

    states: (B, num_states) f32
    w1: (num_states, 80)   -- torch Linear weight transposed to (in, out)
    b1: (80,)
    w2: (80, num_actions)
    b2: (num_actions,)
    Returns (B, num_actions) f32 Q-values.
    """
    B, K = states.shape
    H = w1.shape[1]
    A = w2.shape[1]
    H_pad = _round_up(H, LANE)     # 80  -> 128
    A_pad = _round_up(A, LANE)     # 2   -> 128 (lane-dense output)

    # Zero-pad weights/biases to 128-aligned tiles; padding is exact (ReLU(0)=0,
    # padded W2 rows hit zero hidden columns, padded output cols are sliced off).
    w1_p = jnp.zeros((K, H_pad), matmul_dtype).at[:, :H].set(w1.astype(matmul_dtype))
    b1_p = jnp.zeros((1, H_pad), jnp.float32).at[:, :H].set(b1.reshape(1, H))
    w2_p = jnp.zeros((H_pad, A_pad), matmul_dtype).at[:H, :A].set(w2.astype(matmul_dtype))
    b2_p = jnp.zeros((1, A_pad), jnp.float32).at[:, :A].set(b2.reshape(1, A))

    # Batch tile: cap at block_batch (256 rows) but shrink for tiny batches so
    # small interactive calls don't pad to a full tile.
    TB = min(block_batch, _round_up(B, 8))
    B_pad = _round_up(B, TB)
    x = states.astype(matmul_dtype)
    if B_pad != B:
        x = jnp.zeros((B_pad, K), matmul_dtype).at[:B].set(x)

    grid = (B_pad // TB,)

    flops = 2 * B_pad * (K * H_pad + H_pad * A_pad)
    bytes_accessed = (
        x.size * x.dtype.itemsize
        + w1_p.size * w1_p.dtype.itemsize
        + w2_p.size * w2_p.dtype.itemsize
        + (b1_p.size + b2_p.size + B_pad * A_pad) * 4
    )

    out = pl.pallas_call(
        qnetwork_kernel,
        out_shape=jax.ShapeDtypeStruct((B_pad, A_pad), jnp.float32),
        grid_spec=pltpu.PrefetchScalarGridSpec(
            num_scalar_prefetch=0,
            grid=grid,
            in_specs=[
                pl.BlockSpec((TB, K), lambda i: (i, 0)),        # batch-tiled states
                pl.BlockSpec((K, H_pad), lambda i: (0, 0)),     # resident W1
                pl.BlockSpec((1, H_pad), lambda i: (0, 0)),     # resident b1
                pl.BlockSpec((H_pad, A_pad), lambda i: (0, 0)), # resident W2
                pl.BlockSpec((1, A_pad), lambda i: (0, 0)),     # resident b2
            ],
            out_specs=pl.BlockSpec((TB, A_pad), lambda i: (i, 0)),
        ),
        compiler_params=pltpu.CompilerParams(
            # Batch axis is independent -> shard across the 2 TCs on v7x.
            dimension_semantics=("parallel",),
        ),
        cost_estimate=pl.CostEstimate(
            flops=flops, transcendentals=0, bytes_accessed=bytes_accessed),
    )(x, w1_p, b1_p, w2_p, b2_p)

    return out[:B, :A]


def init_params(key, num_states, num_actions, h1dim=80):
    """Deterministic init mimicking torch.nn.Linear default (uniform +/- 1/sqrt(fan_in))."""
    k1, k2, k3, k4 = jax.random.split(key, 4)
    lim1 = 1.0 / jnp.sqrt(num_states)
    lim2 = 1.0 / jnp.sqrt(h1dim)
    # torch Linear weight is (out, in); store transposed as (in, out) for the kernel.
    w1 = jax.random.uniform(k1, (num_states, h1dim), jnp.float32, -lim1, lim1)
    b1 = jax.random.uniform(k2, (h1dim,), jnp.float32, -lim1, lim1)
    w2 = jax.random.uniform(k3, (h1dim, num_actions), jnp.float32, -lim2, lim2)
    b2 = jax.random.uniform(k4, (num_actions,), jnp.float32, -lim2, lim2)
    return w1, b1, w2, b2


if __name__ == "__main__":
    # CartPole-like sizes: num_states=4 observations, num_actions=2, small batch.
    B, num_states, num_actions = 8, 4, 2
    key = jax.random.PRNGKey(0)
    k_params, k_x = jax.random.split(key)
    w1, b1, w2, b2 = init_params(k_params, num_states, num_actions)
    states = jax.random.normal(k_x, (B, num_states), jnp.float32)

    out = qnetwork_forward(states, w1, b1, w2, b2)
    jax.block_until_ready(out)
    assert out.shape == (B, num_actions)

    # Reference with identical matmul precision (bf16 inputs, f32 accumulation).
    xb = states.astype(jnp.bfloat16)
    w1b = w1.astype(jnp.bfloat16)
    w2b = w2.astype(jnp.bfloat16)
    h1 = jnp.maximum(
        jnp.dot(xb, w1b, preferred_element_type=jnp.float32) + b1.reshape(1, -1), 0.0)
    ref = (jnp.dot(h1.astype(jnp.bfloat16), w2b, preferred_element_type=jnp.float32)
           + b2.reshape(1, -1))
    assert jnp.allclose(out, ref, atol=1e-3, rtol=1e-3)

    # Sanity check vs. full-f32 math (loose tolerance due to bf16 matmul inputs).
    ref_f32 = jnp.maximum(states @ w1 + b1.reshape(1, -1), 0.0) @ w2 + b2.reshape(1, -1)
    assert jnp.allclose(out, ref_f32, atol=5e-2, rtol=5e-2)

    print("KERNEL_OK")
</pallas_src>

<mosaic_0001>
module attributes {stable_mosaic.version = 11 : i64} {
  func.func @qnetwork_kernel(%arg0: i32, %arg1: memref<8x4xbf16, #tpu.memory_space<vmem>>, %arg2: memref<4x128xbf16, #tpu.memory_space<vmem>>, %arg3: memref<1x128xf32, #tpu.memory_space<vmem>>, %arg4: memref<128x128xbf16, #tpu.memory_space<vmem>>, %arg5: memref<1x128xf32, #tpu.memory_space<vmem>>, %arg6: memref<8x128xf32, #tpu.memory_space<vmem>>) attributes {dimension_semantics = [#tpu.dimension_semantics<parallel>], iteration_bounds = array<i64: 1>, scalar_prefetch = 0 : i64, scratch_operands = 0 : i64, tpu.core_type = #tpu.core_type<tc>, window_params = [{transform_indices = @transform_0, window_bounds = array<i64: 8, 4>}, {pipeline_mode = #tpu.pipeline_mode<synchronous>, transform_indices = @transform_1, window_bounds = array<i64: 4, 128>}, {pipeline_mode = #tpu.pipeline_mode<synchronous>, transform_indices = @transform_2, window_bounds = array<i64: 1, 128>}, {pipeline_mode = #tpu.pipeline_mode<synchronous>, transform_indices = @transform_3, window_bounds = array<i64: 128, 128>}, {pipeline_mode = #tpu.pipeline_mode<synchronous>, transform_indices = @transform_4, window_bounds = array<i64: 1, 128>}, {transform_indices = @transform_5, window_bounds = array<i64: 8, 128>}]} {
    %c0 = arith.constant 0 : index
    %c0_0 = arith.constant 0 : index
    %0 = vector.load %arg1[%c0, %c0_0] : memref<8x4xbf16, #tpu.memory_space<vmem>>, vector<8x4xbf16>
    %c0_1 = arith.constant 0 : index
    %c0_2 = arith.constant 0 : index
    %1 = vector.load %arg2[%c0_1, %c0_2] : memref<4x128xbf16, #tpu.memory_space<vmem>>, vector<4x128xbf16>
    %cst = arith.constant dense<0.000000e+00> : vector<8x128xf32>
    %2 = tpu.matmul %0, %1, %cst {dimension_numbers = #tpu.dot_dimension_numbers<[1], [0], [0], [1], [0, 0, 1, 1], [], []>} : vector<8x4xbf16>, vector<4x128xbf16>, vector<8x128xf32> -> vector<8x128xf32>
    %c0_3 = arith.constant 0 : index
    %c0_4 = arith.constant 0 : index
    %3 = vector.load %arg3[%c0_3, %c0_4] : memref<1x128xf32, #tpu.memory_space<vmem>>, vector<1x128xf32>
    %4 = vector.broadcast %3 : vector<1x128xf32> to vector<8x128xf32>
    %5 = arith.addf %2, %4 : vector<8x128xf32>
    %cst_5 = arith.constant 0.000000e+00 : f32
    %6 = vector.broadcast %cst_5 : f32 to vector<8x128xf32>
    %7 = arith.maximumf %5, %6 : vector<8x128xf32>
    %8 = arith.truncf %7 : vector<8x128xf32> to vector<8x128xbf16>
    %c0_6 = arith.constant 0 : index
    %c0_7 = arith.constant 0 : index
    %9 = vector.load %arg4[%c0_6, %c0_7] : memref<128x128xbf16, #tpu.memory_space<vmem>>, vector<128x128xbf16>
    %cst_8 = arith.constant dense<0.000000e+00> : vector<8x128xf32>
    %10 = tpu.matmul %8, %9, %cst_8 {dimension_numbers = #tpu.dot_dimension_numbers<[1], [0], [0], [1], [0, 0, 1, 1], [], []>} : vector<8x128xbf16>, vector<128x128xbf16>, vector<8x128xf32> -> vector<8x128xf32>
    %c0_9 = arith.constant 0 : index
    %c0_10 = arith.constant 0 : index
    %11 = vector.load %arg5[%c0_9, %c0_10] : memref<1x128xf32, #tpu.memory_space<vmem>>, vector<1x128xf32>
    %12 = vector.broadcast %11 : vector<1x128xf32> to vector<8x128xf32>
    %13 = arith.addf %10, %12 : vector<8x128xf32>
    %c0_11 = arith.constant 0 : index
    %c0_12 = arith.constant 0 : index
    %14 = vector.load %arg6[%c0_11, %c0_12] : memref<8x128xf32, #tpu.memory_space<vmem>>, vector<8x128xf32>
    tpu.vector_store %arg6[%c0_11, %c0_12], %13 {strides = array<i32>} : memref<8x128xf32, #tpu.memory_space<vmem>>, vector<8x128xf32>,
    return
  }
  func.func @transform_0(%arg0: i32) -> (i32, i32) {
    %c0_i32 = arith.constant 0 : i32
    %c0_i32_0 = arith.constant 0 : i32
    return %arg0, %c0_i32 : i32, i32
  }
  func.func @transform_1(%arg0: i32) -> (i32, i32) {
    %c0_i32 = arith.constant 0 : i32
    %c0_i32_0 = arith.constant 0 : i32
    %c0_i32_1 = arith.constant 0 : i32
    return %c0_i32, %c0_i32_0 : i32, i32
  }
  func.func @transform_2(%arg0: i32) -> (i32, i32) {
    %c0_i32 = arith.constant 0 : i32
    %c0_i32_0 = arith.constant 0 : i32
    %c0_i32_1 = arith.constant 0 : i32
    return %c0_i32, %c0_i32_0 : i32, i32
  }
  func.func @transform_3(%arg0: i32) -> (i32, i32) {
    %c0_i32 = arith.constant 0 : i32
    %c0_i32_0 = arith.constant 0 : i32
    %c0_i32_1 = arith.constant 0 : i32
    return %c0_i32, %c0_i32_0 : i32, i32
  }
  func.func @transform_4(%arg0: i32) -> (i32, i32) {
    %c0_i32 = arith.constant 0 : i32
    %c0_i32_0 = arith.constant 0 : i32
    %c0_i32_1 = arith.constant 0 : i32
    return %c0_i32, %c0_i32_0 : i32, i32
  }
  func.func @transform_5(%arg0: i32) -> (i32, i32) {
    %c0_i32 = arith.constant 0 : i32
    %c0_i32_0 = arith.constant 0 : i32
    return %arg0, %c0_i32 : i32, i32
  }
}

</mosaic_0001>

<bundles_post_ra>
// kernel: tpu_custom_call.1
= control target key start
LH: loop header
LB: loop body
LE: loop exit
PB: predicated region body
PF: predicated region fallthrough
CT: control target
= control target key end

     0   :  { %10 = vsyncpa [#allocation3], 0  ;;  %s317_s0 = inlined_call_operand.vmem [shape: bf16[8,4], index: 0, kind: input, shape index: {}]   ;;  %s318_s1 = inlined_call_operand.vmem [shape: bf16[4,128], index: 1, kind: input, shape index: {}]   ;;  %s319_s2 = inlined_call_operand.vmem [shape: f32[1,128], index: 2, kind: input, shape index: {}]   ;;  %s320_s3 = inlined_call_operand.hbm [shape: bf16[128,128], index: 3, kind: input, shape index: {}]   ;;  %s321_s4 = inlined_call_operand.vmem [shape: f32[1,128], index: 4, kind: input, shape index: {}]   ;;  %s322_s5 = inlined_call_operand.hbm [shape: f32[8,128], index: 5, kind: output, shape index: {}]  }
   0x1   :  { %11 = vsyncpa [#allocation4], 0  ;;  %s22_s20 = sshll.u32 %s320_s3, 4  ;;  %s265_s21 = smov [#allocation2]   ;;  %s23_s20 = int_to_ptr.hbm [resolvable:$true] %s22_s20 }
   0x2   :  { %s24_s22 = sshll.u32 %s265_s21, 4  ;;  %s266_s23 = smov 64   ;;  %s25_s22 = int_to_ptr.vmem [resolvable:$true] %s24_s22 }
   0x3   :  { %s267_s24 = smov 4  }
   0x4   :  { %30 = dma.hbm_to_vmem [thread:$0]  %s23_s20, 1024, %s25_s22, [#allocation3], %s266_s23, %s266_s23, %s267_s24  }
   0x5   :  { %261 = dma.done.wait [#allocation3], 1024  }
   0x6   :  { %262 = vsyncadd [#allocation3], 4294966272  ;;  %vm48_vm0 = vcmask 1041408   ;;  %v39_v0 = vld [vmem:[%s318_s1] sm:$0x3]  ;;  %v206_v1 = vld [vmem:[#allocation2 + $0x38] sm:$0xff] }
   0x7   :  { %v50_v2 = vsel %vm48_vm0, %v39_v0, 0  ;;  %v38_v3 = vld [vmem:[%s317_s0] sm:$0xf]  ;;  %vm44_vm1 = vcmask 31744   ;;  %135 = vmatpush.bf16.msra.mxu1 %v206_v1  ;;  %v205_v4 = vld [vmem:[#allocation2 + $0x30] sm:$0xff]  ;;  %v204_v5 = vld [vmem:[#allocation2 + $0x28] sm:$0xff] }
   0x8   :  { %59 = vmatpush.bf16.msra.mxu0 %v50_v2  ;;  %v203_v6 = vld [vmem:[#allocation2 + $0x20] sm:$0xff]  ;;  %v202_v7 = vld [vmem:[#allocation2 + $0x18] sm:$0xff]  ;;  %v201_v8 = vld [vmem:[#allocation2 + $0x10] sm:$0xff]  ;;  %s268_s30 = smov [#allocation5]   ;;  %s156_s9 = sshll.u32 %s322_s5, 4  ;;  %s157_s9 = int_to_ptr.hbm [resolvable:$true] %s156_s9 }
   0x9   :  { %v200_v9 = vld [vmem:[#allocation2 + $0x8] sm:$0xff]  ;;  %v199_v10 = vld [vmem:[#allocation2] sm:$0xff]  ;;  %s154_s6 = sshll.u32 %s268_s30, 4  ;;  %s155_s6 = int_to_ptr.vmem [resolvable:$true] %s154_s6 }
   0xa   :  { %v211_v11 = vld [vmem:[%s319_s2] ss:$0 sm:$0xff] }
   0xb   :  { %166 = vmatmul.msk.bf16.vlgmr.msra.gmra.mxu0 %vm44_vm1, %v38_v3  ;;  %136 = vmatpush.bf16.msra.mxu1 %v205_v4  ;;  %v212_v17 = vld [vmem:[%s321_s4] ss:$0 sm:$0xff] }
   0xf   :  { %137 = vmatpush.bf16.msra.mxu1 %v204_v5 }
  0x13   :  { %138 = vmatpush.bf16.msra.mxu1 %v203_v6 }
  0x17   :  { %139 = vmatpush.bf16.msra.mxu1 %v202_v7 }
  0x1b   :  { %140 = vmatpush.bf16.msra.mxu1 %v201_v8 }
  0x1f   :  { %141 = vmatpush.bf16.msra.mxu1 %v200_v9 }
  0x23   :  { %142 = vmatpush.bf16.msra.mxu1 %v199_v10 }
  0x88   :  { %v61_v12 = vpop.f32.mrf.mxu0 }
  0x89   :  { %v62_v13 = vadd.f32 %v211_v11, %v61_v12 }
  0x8b   :  { %v65_v14 = vmax.f32 %v62_v13, 0.0 }
  0x8d   :  { %v66_v15 = vpack.c.bf16 %v65_v14, %v65_v14 }
  0x8f   :  { %143 = vmatmul.bf16.vlgmr.msra.gmra.mxu1 %v66_v15 }
  0x90   :  { %v63_v16 = vpop.f32.mrf.mxu0 }
 0x10c   :  { %v144_v18 = vpop.f32.mrf.mxu1 }
 0x10d   :  { %v145_v19 = vadd.f32 %v212_v17, %v144_v18 }
 0x10f   :  { %148 = vst [vmem:[#allocation5] sm:$0xff] %v145_v19 }
 0x110   :  { %159 = dma.vmem_to_hbm [thread:$0]  %s155_s6, 128, %s157_s9, [#allocation4]  }
 0x114   :  { %v146_v20 = vpop.f32.mrf.mxu1 }
 0x115   :  { %263 = dma.done.wait [#allocation4], 128  }
 0x116   :  { %264 = vsyncadd [#allocation4], 4294967168 }
 0x117   :  { %164 = vsyncpa [#allocation3], 1 }
 0x118   :  { %165 = vsyncpa [#allocation4], 1 }

</bundles_post_ra>
